<compile_context>
chip_gen: v7x
topology: tpu7x:2x2x1
jax: 0.10.0
libtpu: 0.0.40
codegen_flags: <defaults>
</compile_context>

<pallas_src>
import jax
import jax.numpy as jnp
from jax import lax
from jax.experimental import pallas as pl
from jax.experimental.pallas import tpu as pltpu


def _sampler_kernel(tri_ref, sel_ref, freq_ref, mask_ref, u_ref, idx_ref):
    # tri_ref : (N, N)    f32  upper-triangular prefix-sum matrix (resident, const index)
    # sel_ref : (K*N, K)  f32  block-diagonal ones selector; rows j*N+(N-1) are zero
    # freq_ref: (TS, N)   f32  pop_freqs rows of the TS target locations
    # mask_ref: (TS, N)   bf16 1 = allowed, 0 = already visited (exclude_visited)
    # u_ref   : (TS, K)   f32  uniform randoms, one per requested negative
    # idx_ref : (TS, K)   i32  sampled slot index into the N-neighbor table
    N = freq_ref.shape[1]
    K = u_ref.shape[1]

    freq = freq_ref[...]
    mask = mask_ref[...].astype(jnp.float32)
    u = u_ref[...]
    tri = tri_ref[...]

    # Unnormalized prefix sums on the MXU.  tri's last column is all ones, so
    # column N-1 *is* the row total -> no cross-lane (XLU) reductions needed.
    mf = freq * mask
    cum_m = jnp.dot(mf, tri, preferred_element_type=jnp.float32)    # masked cumsum
    cum_u = jnp.dot(freq, tri, preferred_element_type=jnp.float32)  # unmasked cumsum
    total_m = cum_m[:, N - 1:N]                                     # (TS, 1)

    # All-neighbors-visited fallback to the unmasked distribution (branch-free).
    # The reference rejection loop would spin forever in that case.
    cum = jnp.where(total_m > 0.0, cum_m, cum_u)                    # (TS, N)
    total = cum[:, N - 1:N]                                         # (TS, 1)
    thresh = u * total                                              # (TS, K)

    # bisect_left(cum_prob, r, hi=N-1) == #{ n < N-1 : cum[n] < r * total }.
    # Comparisons stay on the VPU; the lane-axis counting runs on the (idle) MXU
    # via the ones selector, whose zeroed rows at n = N-1 implement hi = N-1.
    less_cols = [(cum < thresh[:, j:j + 1]).astype(jnp.float32) for j in range(K)]
    less = jnp.concatenate(less_cols, axis=-1)                      # (TS, K*N)
    idx = jnp.dot(less, sel_ref[...], preferred_element_type=jnp.float32)  # (TS, K)
    idx_ref[...] = idx.astype(jnp.int32)


def knn_popularity_sampler_forward(trg_seq, k, user, key, *,
                                   nearby_locs_finder, pop_freqs, user_visited,
                                   exclude_visited=True, rows_per_step=512):
    """JAX/Pallas port of KNNPopularitySampler.forward.

    trg_seq: (S, C) int32 check-ins; trg_seq[:, 1] is the 1-indexed target location.
    Returns (neg_samples (S, k) int32, probs (S, k) float32).
    """
    S = trg_seq.shape[0]
    N = nearby_locs_finder.shape[1]

    rows = trg_seq[:, 1] - 1                                    # target loc -> table row
    # TODO(synk): the row gathers below could move in-kernel (PrefetchScalarGridSpec
    # with num_scalar_prefetch=1 + manual DMA of the TS rows from HBM); kept in the
    # wrapper because the visited-mask gather needs `locs` host-side anyway and XLA
    # fuses these into one gather pass.
    locs = nearby_locs_finder[rows]                             # (S, N) int32
    freqs = pop_freqs[rows].astype(jnp.float32)                 # (S, N) f32
    if exclude_visited:
        visited_sel = user_visited[user][locs - 1]              # (S, N) bool
        mask = jnp.where(visited_sel, 0.0, 1.0).astype(jnp.bfloat16)
    else:
        mask = jnp.ones((S, N), jnp.bfloat16)
    # TODO(synk): the reference draws CPU random.random() in an unbounded rejection
    # loop; here we draw k uniforms per check-in and sample from the masked /
    # renormalized distribution instead (equivalent when any neighbor is allowed).
    u = jax.random.uniform(key, (S, k), dtype=jnp.float32)

    # Tile selection: large row tiles (up to rows_per_step) amortize per-grid-step
    # overhead; multiple of 16 so the bf16 mask block tiles cleanly; cap so the
    # grid keeps >=2 steps when there is enough work (both v7x TensorCores busy).
    Sp_min = -(-S // 16) * 16
    TS = min(rows_per_step, Sp_min)
    if Sp_min >= 32:
        TS = min(TS, max(16, (-(-(Sp_min // 2) // 16)) * 16))
    TS = max(16, (TS // 16) * 16)
    Sp = -(-S // TS) * TS
    if Sp != S:
        pad = Sp - S
        freqs_p = jnp.pad(freqs, ((0, pad), (0, 0)))
        mask_p = jnp.pad(mask, ((0, pad), (0, 0)))
        u_p = jnp.pad(u, ((0, pad), (0, 0)))
    else:
        freqs_p, mask_p, u_p = freqs, mask, u

    # Constant-index resident operands (built once in the wrapper).
    tri = (lax.broadcasted_iota(jnp.int32, (N, N), 0)
           <= lax.broadcasted_iota(jnp.int32, (N, N), 1)).astype(jnp.float32)
    r = jnp.arange(k * N)
    sel = ((r[:, None] // N == jnp.arange(k)[None, :])       # column block j
           & (r[:, None] % N < N - 1)).astype(jnp.float32)   # exclude slot N-1 (hi=N-1)

    row_spec = pl.BlockSpec((TS, N), lambda b: (b, 0))
    col_spec = pl.BlockSpec((TS, k), lambda b: (b, 0))

    idx = pl.pallas_call(
        _sampler_kernel,
        grid=(Sp // TS,),
        in_specs=[pl.BlockSpec((N, N), lambda b: (0, 0)),      # tri (resident)
                  pl.BlockSpec((k * N, k), lambda b: (0, 0)),  # sel (resident)
                  row_spec,                                    # freqs
                  row_spec,                                    # mask (bf16)
                  col_spec],                                   # uniforms
        out_specs=col_spec,
        out_shape=jax.ShapeDtypeStruct((Sp, k), jnp.int32),
        compiler_params=pltpu.CompilerParams(dimension_semantics=("parallel",)),
    )(tri, sel, freqs_p, mask_p, u_p)[:S]

    # Tiny (S, k) gathers; probs come from the same pop_freqs values the reference
    # uses (p = pop_freqs[trg_loc-1, sample], int-truncated upstream), as float32.
    neg = jnp.take_along_axis(locs, idx, axis=1)
    probs = jnp.take_along_axis(freqs, idx, axis=1)
    # torch.long would be int64; JAX x64 is off by default, so ids stay int32.
    return neg, probs


if __name__ == "__main__":
    L = 256      # number of locations
    N = 128      # num_nearest
    U = 4        # number of users
    S = 16       # target sequence length
    K = 8        # negatives per check-in

    key = jax.random.PRNGKey(0)
    k_knn, k_freq, k_vis, k_trg, k_samp = jax.random.split(key, 5)

    # query_sys.knn_results[:, :num_nearest] -> (L, N) 1-indexed location ids
    nearby_locs_finder = jax.random.randint(k_knn, (L, N), 1, L + 1, dtype=jnp.int32)
    # self.loc2freq = log(loc2freq + 1); assignment into an int32 array truncates,
    # which we replicate with the .astype(int32) below.
    raw_freq = jax.random.randint(k_freq, (L,), 3, 1000).astype(jnp.float32)
    loc2freq = jnp.log(raw_freq + 1.0)
    pop_freqs = loc2freq[nearby_locs_finder - 1].astype(jnp.int32)    # (L, N)
    # user_visited_locs -> boolean membership table (U, L), indexed by loc-1
    user_visited = jax.random.bernoulli(k_vis, 0.1, (U, L))
    # trg_seq: check_in[1] is the target location id
    trg_locs = jax.random.randint(k_trg, (S,), 1, L + 1, dtype=jnp.int32)
    trg_seq = jnp.stack([jnp.arange(S, dtype=jnp.int32), trg_locs], axis=1)

    neg_samples, probs = knn_popularity_sampler_forward(
        trg_seq, K, user=2, key=k_samp,
        nearby_locs_finder=nearby_locs_finder, pop_freqs=pop_freqs,
        user_visited=user_visited, exclude_visited=True)
    jax.block_until_ready((neg_samples, probs))
    assert neg_samples.shape == (S, K) and neg_samples.dtype == jnp.int32
    assert probs.shape == (S, K) and probs.dtype == jnp.float32
    # Sampled ids must come from the target rows' neighbor tables.
    rows = trg_seq[:, 1] - 1
    tables = nearby_locs_finder[rows]
    assert bool(jnp.all(jnp.any(tables[:, None, :] == neg_samples[:, :, None], axis=-1)))
    # Sampled locations must not be visited by the user (exclude_visited semantics),
    # unless every neighbor of a row is visited (fallback).
    visited_tbl = user_visited[2]
    any_allowed = jnp.any(~visited_tbl[tables - 1], axis=-1, keepdims=True)
    assert bool(jnp.all(jnp.where(any_allowed, ~visited_tbl[neg_samples - 1], True)))
    print("KERNEL_OK")
</pallas_src>

<mosaic_0001>
module attributes {stable_mosaic.version = 11 : i64} {
  func.func @_sampler_kernel(%arg0: i32, %arg1: memref<128x128xf32, #tpu.memory_space<vmem>>, %arg2: memref<1024x8xf32, #tpu.memory_space<vmem>>, %arg3: memref<16x128xf32, #tpu.memory_space<vmem>>, %arg4: memref<16x128xbf16, #tpu.memory_space<vmem>>, %arg5: memref<16x8xf32, #tpu.memory_space<vmem>>, %arg6: memref<16x8xi32, #tpu.memory_space<vmem>>) attributes {dimension_semantics = [#tpu.dimension_semantics<parallel>], iteration_bounds = array<i64: 1>, scalar_prefetch = 0 : i64, scratch_operands = 0 : i64, tpu.core_type = #tpu.core_type<tc>, window_params = [{pipeline_mode = #tpu.pipeline_mode<synchronous>, transform_indices = @transform_0, window_bounds = array<i64: 128, 128>}, {pipeline_mode = #tpu.pipeline_mode<synchronous>, transform_indices = @transform_1, window_bounds = array<i64: 1024, 8>}, {transform_indices = @transform_2, window_bounds = array<i64: 16, 128>}, {transform_indices = @transform_3, window_bounds = array<i64: 16, 128>}, {transform_indices = @transform_4, window_bounds = array<i64: 16, 8>}, {transform_indices = @transform_5, window_bounds = array<i64: 16, 8>}]} {
    %c0 = arith.constant 0 : index
    %c0_0 = arith.constant 0 : index
    %0 = vector.load %arg3[%c0, %c0_0] : memref<16x128xf32, #tpu.memory_space<vmem>>, vector<16x128xf32>
    %c0_1 = arith.constant 0 : index
    %c0_2 = arith.constant 0 : index
    %1 = vector.load %arg4[%c0_1, %c0_2] : memref<16x128xbf16, #tpu.memory_space<vmem>>, vector<16x128xbf16>
    %2 = arith.extf %1 : vector<16x128xbf16> to vector<16x128xf32>
    %c0_3 = arith.constant 0 : index
    %c0_4 = arith.constant 0 : index
    %3 = vector.load %arg5[%c0_3, %c0_4] : memref<16x8xf32, #tpu.memory_space<vmem>>, vector<16x8xf32>
    %c0_5 = arith.constant 0 : index
    %c0_6 = arith.constant 0 : index
    %4 = vector.load %arg1[%c0_5, %c0_6] : memref<128x128xf32, #tpu.memory_space<vmem>>, vector<128x128xf32>
    %5 = arith.mulf %0, %2 : vector<16x128xf32>
    %cst = arith.constant dense<0.000000e+00> : vector<16x128xf32>
    %6 = tpu.matmul %5, %4, %cst {dimension_numbers = #tpu.dot_dimension_numbers<[1], [0], [0], [1], [0, 0, 1, 1], [], []>} : vector<16x128xf32>, vector<128x128xf32>, vector<16x128xf32> -> vector<16x128xf32>
    %cst_7 = arith.constant dense<0.000000e+00> : vector<16x128xf32>
    %7 = tpu.matmul %0, %4, %cst_7 {dimension_numbers = #tpu.dot_dimension_numbers<[1], [0], [0], [1], [0, 0, 1, 1], [], []>} : vector<16x128xf32>, vector<128x128xf32>, vector<16x128xf32> -> vector<16x128xf32>
    %8 = vector.extract_strided_slice %6 {offsets = [0, 127], sizes = [16, 1], strides = [1, 1]} : vector<16x128xf32> to vector<16x1xf32>
    %cst_8 = arith.constant 0.000000e+00 : f32
    %9 = vector.broadcast %cst_8 : f32 to vector<16x1xf32>
    %10 = arith.cmpf ogt, %8, %9 : vector<16x1xf32>
    %11 = vector.shape_cast %10 : vector<16x1xi1> to vector<16x1xi1>
    %12 = vector.broadcast %11 : vector<16x1xi1> to vector<16x128xi1>
    %13 = arith.select %12, %6, %7 : vector<16x128xi1>, vector<16x128xf32>
    %14 = vector.extract_strided_slice %13 {offsets = [0, 127], sizes = [16, 1], strides = [1, 1]} : vector<16x128xf32> to vector<16x1xf32>
    %15 = vector.broadcast %14 : vector<16x1xf32> to vector<16x8xf32>
    %16 = arith.mulf %3, %15 : vector<16x8xf32>
    %17 = vector.extract_strided_slice %16 {offsets = [0, 0], sizes = [16, 1], strides = [1, 1]} : vector<16x8xf32> to vector<16x1xf32>
    %18 = vector.broadcast %17 : vector<16x1xf32> to vector<16x128xf32>
    %19 = arith.cmpf olt, %13, %18 : vector<16x128xf32>
    %20 = arith.extui %19 : vector<16x128xi1> to vector<16x128xi32>
    %21 = arith.sitofp %20 : vector<16x128xi32> to vector<16x128xf32>
    %22 = vector.extract_strided_slice %16 {offsets = [0, 1], sizes = [16, 1], strides = [1, 1]} : vector<16x8xf32> to vector<16x1xf32>
    %23 = vector.broadcast %22 : vector<16x1xf32> to vector<16x128xf32>
    %24 = arith.cmpf olt, %13, %23 : vector<16x128xf32>
    %25 = arith.extui %24 : vector<16x128xi1> to vector<16x128xi32>
    %26 = arith.sitofp %25 : vector<16x128xi32> to vector<16x128xf32>
    %27 = vector.extract_strided_slice %16 {offsets = [0, 2], sizes = [16, 1], strides = [1, 1]} : vector<16x8xf32> to vector<16x1xf32>
    %28 = vector.broadcast %27 : vector<16x1xf32> to vector<16x128xf32>
    %29 = arith.cmpf olt, %13, %28 : vector<16x128xf32>
    %30 = arith.extui %29 : vector<16x128xi1> to vector<16x128xi32>
    %31 = arith.sitofp %30 : vector<16x128xi32> to vector<16x128xf32>
    %32 = vector.extract_strided_slice %16 {offsets = [0, 3], sizes = [16, 1], strides = [1, 1]} : vector<16x8xf32> to vector<16x1xf32>
    %33 = vector.broadcast %32 : vector<16x1xf32> to vector<16x128xf32>
    %34 = arith.cmpf olt, %13, %33 : vector<16x128xf32>
    %35 = arith.extui %34 : vector<16x128xi1> to vector<16x128xi32>
    %36 = arith.sitofp %35 : vector<16x128xi32> to vector<16x128xf32>
    %37 = vector.extract_strided_slice %16 {offsets = [0, 4], sizes = [16, 1], strides = [1, 1]} : vector<16x8xf32> to vector<16x1xf32>
    %38 = vector.broadcast %37 : vector<16x1xf32> to vector<16x128xf32>
    %39 = arith.cmpf olt, %13, %38 : vector<16x128xf32>
    %40 = arith.extui %39 : vector<16x128xi1> to vector<16x128xi32>
    %41 = arith.sitofp %40 : vector<16x128xi32> to vector<16x128xf32>
    %42 = vector.extract_strided_slice %16 {offsets = [0, 5], sizes = [16, 1], strides = [1, 1]} : vector<16x8xf32> to vector<16x1xf32>
    %43 = vector.broadcast %42 : vector<16x1xf32> to vector<16x128xf32>
    %44 = arith.cmpf olt, %13, %43 : vector<16x128xf32>
    %45 = arith.extui %44 : vector<16x128xi1> to vector<16x128xi32>
    %46 = arith.sitofp %45 : vector<16x128xi32> to vector<16x128xf32>
    %47 = vector.extract_strided_slice %16 {offsets = [0, 6], sizes = [16, 1], strides = [1, 1]} : vector<16x8xf32> to vector<16x1xf32>
    %48 = vector.broadcast %47 : vector<16x1xf32> to vector<16x128xf32>
    %49 = arith.cmpf olt, %13, %48 : vector<16x128xf32>
    %50 = arith.extui %49 : vector<16x128xi1> to vector<16x128xi32>
    %51 = arith.sitofp %50 : vector<16x128xi32> to vector<16x128xf32>
    %52 = vector.extract_strided_slice %16 {offsets = [0, 7], sizes = [16, 1], strides = [1, 1]} : vector<16x8xf32> to vector<16x1xf32>
    %53 = vector.broadcast %52 : vector<16x1xf32> to vector<16x128xf32>
    %54 = arith.cmpf olt, %13, %53 : vector<16x128xf32>
    %55 = arith.extui %54 : vector<16x128xi1> to vector<16x128xi32>
    %56 = arith.sitofp %55 : vector<16x128xi32> to vector<16x128xf32>
    %57 = tpu.concatenate %21, %26, %31, %36, %41, %46, %51, %56 in 1 : vector<16x128xf32>, vector<16x128xf32>, vector<16x128xf32>, vector<16x128xf32>, vector<16x128xf32>, vector<16x128xf32>, vector<16x128xf32>, vector<16x128xf32> -> vector<16x1024xf32>
    %c0_9 = arith.constant 0 : index
    %c0_10 = arith.constant 0 : index
    %58 = vector.load %arg2[%c0_9, %c0_10] : memref<1024x8xf32, #tpu.memory_space<vmem>>, vector<1024x8xf32>
    %cst_11 = arith.constant dense<0.000000e+00> : vector<16x8xf32>
    %59 = tpu.matmul %57, %58, %cst_11 {dimension_numbers = #tpu.dot_dimension_numbers<[1], [0], [0], [1], [0, 0, 1, 1], [], []>} : vector<16x1024xf32>, vector<1024x8xf32>, vector<16x8xf32> -> vector<16x8xf32>
    %60 = arith.fptosi %59 : vector<16x8xf32> to vector<16x8xi32>
    %c0_12 = arith.constant 0 : index
    %c0_13 = arith.constant 0 : index
    %61 = vector.load %arg6[%c0_12, %c0_13] : memref<16x8xi32, #tpu.memory_space<vmem>>, vector<16x8xi32>
    tpu.vector_store %arg6[%c0_12, %c0_13], %60 {strides = array<i32>} : memref<16x8xi32, #tpu.memory_space<vmem>>, vector<16x8xi32>,
    return
  }
  func.func @transform_0(%arg0: i32) -> (i32, i32) {
    %c0_i32 = arith.constant 0 : i32
    %c0_i32_0 = arith.constant 0 : i32
    %c0_i32_1 = arith.constant 0 : i32
    return %c0_i32, %c0_i32_0 : i32, i32
  }
  func.func @transform_1(%arg0: i32) -> (i32, i32) {
    %c0_i32 = arith.constant 0 : i32
    %c0_i32_0 = arith.constant 0 : i32
    %c0_i32_1 = arith.constant 0 : i32
    return %c0_i32, %c0_i32_0 : i32, i32
  }
  func.func @transform_2(%arg0: i32) -> (i32, i32) {
    %c0_i32 = arith.constant 0 : i32
    %c0_i32_0 = arith.constant 0 : i32
    return %arg0, %c0_i32 : i32, i32
  }
  func.func @transform_3(%arg0: i32) -> (i32, i32) {
    %c0_i32 = arith.constant 0 : i32
    %c0_i32_0 = arith.constant 0 : i32
    return %arg0, %c0_i32 : i32, i32
  }
  func.func @transform_4(%arg0: i32) -> (i32, i32) {
    %c0_i32 = arith.constant 0 : i32
    %c0_i32_0 = arith.constant 0 : i32
    return %arg0, %c0_i32 : i32, i32
  }
  func.func @transform_5(%arg0: i32) -> (i32, i32) {
    %c0_i32 = arith.constant 0 : i32
    %c0_i32_0 = arith.constant 0 : i32
    return %arg0, %c0_i32 : i32, i32
  }
}

</mosaic_0001>

<bundles_post_ra>
// kernel: tpu_custom_call.1
= control target key start
LH: loop header
LB: loop body
LE: loop exit
PB: predicated region body
PF: predicated region fallthrough
CT: control target
= control target key end

     0   :  { %v1292_v31 = vmov 127   ;;  %v1293_v36 = vmov 0   ;;  %v1294_v42 = vmov 1   ;;  %s1829_s0 = inlined_call_operand.vmem [shape: f32[128,128], index: 0, kind: input, shape index: {}]   ;;  %s1830_s2 = inlined_call_operand.vmem [shape: f32[16,128], index: 2, kind: input, shape index: {}]   ;;  %s1831_s3 = inlined_call_operand.vmem [shape: bf16[16,128], index: 3, kind: input, shape index: {}]   ;;  %s1832_s1 = inlined_call_operand.vmem [shape: f32[1024,8], index: 1, kind: input, shape index: {}]   ;;  %s1833_s4 = inlined_call_operand.vmem [shape: f32[16,8], index: 4, kind: input, shape index: {}]   ;;  %s1834_s5 = inlined_call_operand.vmem [shape: s32[16,8], index: 5, kind: output, shape index: {}]  }
   0x1   :  { %v28_v0 = vld [vmem:[%s1829_s0] sm:$0xff]  ;;  %v29_v1 = vld [vmem:[%s1829_s0 + $0x8] sm:$0xff]  ;;  %v30_v2 = vld [vmem:[%s1829_s0 + $0x10] sm:$0xff]  ;;  %1273 = vset.pattern.permute.xlu0 %v1292_v31  ;;  %1274 = vset.pattern.permute.xlu1 %v1292_v31 }
   0x2   :  { %v1067_v3 = vpack.c.bf16 %v29_v1, %v28_v0  ;;  %v31_v4 = vld [vmem:[%s1829_s0 + $0x18] sm:$0xff]  ;;  %v32_v6 = vld [vmem:[%s1829_s0 + $0x20] sm:$0xff]  ;;  %v33_v7 = vld [vmem:[%s1829_s0 + $0x28] sm:$0xff] }
   0x3   :  { %v1071_v5 = vpack.c.bf16 %v31_v4, %v30_v2  ;;  %v1075_v8 = vpack.c.bf16 %v33_v7, %v32_v6  ;;  %v20_v9 = vld [vmem:[%s1830_s2] sm:$0xff]  ;;  %v34_v10 = vld [vmem:[%s1829_s0 + $0x30] sm:$0xff]  ;;  %v35_v11 = vld [vmem:[%s1829_s0 + $0x38] sm:$0xff] }
   0x4   :  { %1068 = vmatprep.subr.bf16.mxu0 %v1067_v3  ;;  %1100 = vmatprep.subr.bf16.mxu1 %v1067_v3  ;;  %v806_v12 = vld [vmem:[%s1831_s3] sm:$0xff]   ;;  %v1079_v14 = vpack.c.bf16 %v35_v11, %v34_v10  ;;  %v37_v17 = vld [vmem:[%s1829_s0 + $0x48] sm:$0xff]  ;;  %v38_v19 = vld [vmem:[%s1829_s0 + $0x50] sm:$0xff] }
   0x5   :  { %1070 = vmatpush3.bf16.msra.mxu0 %v1067_v3  ;;  %1102 = vmatpush3.bf16.msra.mxu1 %v1067_v3  ;;  %v807_v13 = vunpack.c.l.bf16 %v806_v12  ;;  %v36_v16 = vld [vmem:[%s1829_s0 + $0x40] sm:$0xff]  ;;  %v39_v20 = vld [vmem:[%s1829_s0 + $0x58] sm:$0xff]  ;;  %v41_v23 = vld [vmem:[%s1829_s0 + $0x68] sm:$0xff]  ;;  %v808_v28 = vunpack.c.h.bf16 %v806_v12 }
   0x6   :  { %1072 = vmatprep.subr.bf16.mxu0 %v1071_v5  ;;  %1104 = vmatprep.subr.bf16.mxu1 %v1071_v5  ;;  %v1083_v18 = vpack.c.bf16 %v37_v17, %v36_v16  ;;  %v1087_v21 = vpack.c.bf16 %v39_v20, %v38_v19  ;;  %v40_v22 = vld [vmem:[%s1829_s0 + $0x60] sm:$0xff]  ;;  %v42_v25 = vld [vmem:[%s1829_s0 + $0x70] sm:$0xff]  ;;  %v43_v26 = vld [vmem:[%s1829_s0 + $0x78] sm:$0xff] }
   0x7   :  { %1064 = vmatprep.mubr.f32.mxu1 %v20_v9  ;;  %v44_v15 = vmul.f32 %v807_v13, %v20_v9  ;;  %v1091_v24 = vpack.c.bf16 %v41_v23, %v40_v22  ;;  %v1095_v27 = vpack.c.bf16 %v43_v26, %v42_v25  ;;  %v21_v29 = vld [vmem:[%s1830_s2 + $0x8] sm:$0xff]  ;;  %v352_v44 = vld [vmem:[%s1832_s1 + $0x80] sm:$0xff]  ;;  %v354_v49 = vld [vmem:[%s1832_s1 + $0x90] sm:$0xff] }
   0x8   :  { %v45_v30 = vmul.f32 %v808_v28, %v21_v29  ;;  %v353_v45 = vld [vmem:[%s1832_s1 + $0x88] sm:$0xff]  ;;  %v336_v46 = vld [vmem:[%s1832_s1] sm:$0xff]  ;;  %v355_v50 = vld [vmem:[%s1832_s1 + $0x98] sm:$0xff] }
   0x9   :  { %1074 = vmatpush3.bf16.msra.mxu0 %v1071_v5  ;;  %1106 = vmatpush3.bf16.msra.mxu1 %v1071_v5  ;;  %v1131_v47 = vpack.c.bf16 %v353_v45, %v352_v44  ;;  %v337_v48 = vld [vmem:[%s1832_s1 + $0x8] sm:$0xff]  ;;  %v1135_v52 = vpack.c.bf16 %v355_v50, %v354_v49  ;;  %v338_v53 = vld [vmem:[%s1832_s1 + $0x10] sm:$0xff]  ;;  %v339_v54 = vld [vmem:[%s1832_s1 + $0x18] sm:$0xff] }
   0xa   :  { %1076 = vmatprep.subr.bf16.mxu0 %v1075_v8  ;;  %1108 = vmatprep.subr.bf16.mxu1 %v1075_v8  ;;  %v1133_v51 = vpack.c.bf16 %v337_v48, %v336_v46  ;;  %v384_v55 = vld [vmem:[%s1832_s1 + $0x180] sm:$0xff]  ;;  %v385_v56 = vld [vmem:[%s1832_s1 + $0x188] sm:$0xff]  ;;  %v1137_v59 = vpack.c.bf16 %v339_v54, %v338_v53  ;;  %v386_v3 = vld [vmem:[%s1832_s1 + $0x190] sm:$0xff] }
   0xb   :  { %1029 = vmatprep.mubr.f32.mxu0 %v44_v15  ;;  %v368_v57 = vld [vmem:[%s1832_s1 + $0x100] sm:$0xff]  ;;  %v369_v58 = vld [vmem:[%s1832_s1 + $0x108] sm:$0xff]  ;;  %v1163_v60 = vpack.c.bf16 %v385_v56, %v384_v55  ;;  %v387_v4 = vld [vmem:[%s1832_s1 + $0x198] sm:$0xff] }
   0xc   :  { %v1165_v61 = vpack.c.bf16 %v369_v58, %v368_v57  ;;  %v356_v62 = vld [vmem:[%s1832_s1 + $0xa0] sm:$0xff]  ;;  %v357_v63 = vld [vmem:[%s1832_s1 + $0xa8] sm:$0xff]  ;;  %v1167_v5 = vpack.c.bf16 %v387_v4, %v386_v3  ;;  %v370_v6 = vld [vmem:[%s1832_s1 + $0x110] sm:$0xff] }
   0xd   :  { %1078 = vmatpush3.bf16.msra.mxu0 %v1075_v8  ;;  %1110 = vmatpush3.bf16.msra.mxu1 %v1075_v8  ;;  %v340_v0 = vld [vmem:[%s1832_s1 + $0x20] sm:$0xff]  ;;  %v1139_v1 = vpack.c.bf16 %v357_v63, %v356_v62  ;;  %v341_v2 = vld [vmem:[%s1832_s1 + $0x28] sm:$0xff]  ;;  %v371_v7 = vld [vmem:[%s1832_s1 + $0x118] sm:$0xff] }
   0xe   :  { %1080 = vmatprep.subr.bf16.mxu0 %v1079_v14  ;;  %1112 = vmatprep.subr.bf16.mxu1 %v1079_v14  ;;  %v358_v8 = vld [vmem:[%s1832_s1 + $0xb0] sm:$0xff]  ;;  %v1169_v9 = vpack.c.bf16 %v371_v7, %v370_v6  ;;  %v359_v10 = vld [vmem:[%s1832_s1 + $0xb8] sm:$0xff]  ;;  %v1141_v11 = vpack.c.bf16 %v341_v2, %v340_v0  ;;  %v388_v12 = vld [vmem:[%s1832_s1 + $0x1a0] sm:$0xff] }
   0xf   :  { %v389_v13 = vld [vmem:[%s1832_s1 + $0x1a8] sm:$0xff]  ;;  %v1143_v15 = vpack.c.bf16 %v359_v10, %v358_v8  ;;  %v342_v16 = vld [vmem:[%s1832_s1 + $0x30] sm:$0xff]  ;;  %v343_v17 = vld [vmem:[%s1832_s1 + $0x38] sm:$0xff] }
  0x10   :  { %v373_v19 = vld [vmem:[%s1832_s1 + $0x128] sm:$0xff]  ;;  %v360_v20 = vld [vmem:[%s1832_s1 + $0xc0] sm:$0xff]  ;;  %v390_v22 = vld [vmem:[%s1832_s1 + $0x1b0] sm:$0xff]  ;;  %v1145_v25 = vpack.c.bf16 %v343_v17, %v342_v16 }
  0x11   :  { %1082 = vmatpush3.bf16.msra.mxu0 %v1079_v14  ;;  %1114 = vmatpush3.bf16.msra.mxu1 %v1079_v14  ;;  %v372_v14 = vld [vmem:[%s1832_s1 + $0x120] sm:$0xff]  ;;  %v374_v28 = vld [vmem:[%s1832_s1 + $0x130] sm:$0xff]  ;;  %v345_v31 = vld [vmem:[%s1832_s1 + $0x48] sm:$0xff] }
  0x12   :  { %1084 = vmatprep.subr.bf16.mxu0 %v1083_v18  ;;  %1116 = vmatprep.subr.bf16.mxu1 %v1083_v18  ;;  %v1173_v23 = vpack.c.bf16 %v373_v19, %v372_v14  ;;  %v344_v26 = vld [vmem:[%s1832_s1 + $0x40] sm:$0xff]  ;;  %v377_v45 = vld [vmem:[%s1832_s1 + $0x148] sm:$0xff]  ;;  %v394_v48 = vld [vmem:[%s1832_s1 + $0x1d0] sm:$0xff] }
  0x13   :  { %v376_v44 = vld [vmem:[%s1832_s1 + $0x140] sm:$0xff]  ;;  %v395_v49 = vld [vmem:[%s1832_s1 + $0x1d8] sm:$0xff]  ;;  %v378_v56 = vld [vmem:[%s1832_s1 + $0x150] sm:$0xff] }
  0x14   :  { %v364_v50 = vld [vmem:[%s1832_s1 + $0xe0] sm:$0xff]  ;;  %v1183_v55 = vpack.c.bf16 %v395_v49, %v394_v48  ;;  %v379_v57 = vld [vmem:[%s1832_s1 + $0x158] sm:$0xff]  ;;  %v366_v62 = vld [vmem:[%s1832_s1 + $0xf0] sm:$0xff] }
  0x15   :  { %1086 = vmatpush3.bf16.msra.mxu0 %v1083_v18  ;;  %1118 = vmatpush3.bf16.msra.mxu1 %v1083_v18  ;;  %v1171_v18 = vpack.c.bf16 %v389_v13, %v388_v12  ;;  %v348_v54 = vld [vmem:[%s1832_s1 + $0x60] sm:$0xff]  ;;  %v367_v63 = vld [vmem:[%s1832_s1 + $0xf8] sm:$0xff]  ;;  %v1185_v0 = vpack.c.bf16 %v379_v57, %v378_v56  ;;  %v350_v4 = vld [vmem:[%s1832_s1 + $0x70] sm:$0xff] }
  0x16   :  { %1088 = vmatprep.subr.bf16.mxu0 %v1087_v21  ;;  %1120 = vmatprep.subr.bf16.mxu1 %v1087_v21  ;;  %v1159_v3 = vpack.c.bf16 %v367_v63, %v366_v62  ;;  %v26_v7 = vld [vmem:[%s1833_s4] sm:$0xff]  ;;  %v381_v10 = vld [vmem:[%s1832_s1 + $0x168] sm:$0xff]  ;;  %v398_v16 = vld [vmem:[%s1832_s1 + $0x1f0] sm:$0xff] }
  0x17   :  { %v416_v13 = vld [vmem:[%s1832_s1 + $0x280] sm:$0xff]  ;;  %v417_v14 = vld [vmem:[%s1832_s1 + $0x288] sm:$0xff]  ;;  %v399_v17 = vld [vmem:[%s1832_s1 + $0x1f8] sm:$0xff] }
  0x18   :  { %v382_v19 = vld [vmem:[%s1832_s1 + $0x170] sm:$0xff]  ;;  %v421_v48 = vld [vmem:[%s1832_s1 + $0x2a8] sm:$0xff]  ;;  %v432_v49 = vld [vmem:[%s1832_s1 + $0x300] sm:$0xff] }
  0x19   :  { %1090 = vmatpush3.bf16.msra.mxu0 %v1087_v21  ;;  %1122 = vmatpush3.bf16.msra.mxu1 %v1087_v21  ;;  %v361_v21 = vld [vmem:[%s1832_s1 + $0xc8] sm:$0xff]  ;;  %v404_v57 = vld [vmem:[%s1832_s1 + $0x220] sm:$0xff]  ;;  %v434_v63 = vld [vmem:[%s1832_s1 + $0x310] sm:$0xff] }
  0x1a   :  { %1092 = vmatprep.subr.bf16.mxu0 %v1091_v24  ;;  %1124 = vmatprep.subr.bf16.mxu1 %v1091_v24 }
  0x1d   :  { %1094 = vmatpush3.bf16.msra.mxu0 %v1091_v24  ;;  %1126 = vmatpush3.bf16.msra.mxu1 %v1091_v24  ;;  %v391_v24 = vld [vmem:[%s1832_s1 + $0x1b8] sm:$0xff] }
  0x1e   :  { %1096 = vmatprep.subr.bf16.mxu0 %v1095_v27  ;;  %1128 = vmatprep.subr.bf16.mxu1 %v1095_v27 }
  0x21   :  { %1098 = vmatpush3.bf16.msra.mxu0 %v1095_v27  ;;  %1130 = vmatpush3.bf16.msra.mxu1 %v1095_v27  ;;  %v1175_v27 = vpack.c.bf16 %v391_v24, %v390_v22  ;;  %v1295_v22 = vmov 2   ;;  %v27_v24 = vld [vmem:[%s1833_s4 + $0x8] sm:$0xff] }
  0x22   :  { %1132 = vmatprep.subr.bf16.mxu0 %v1131_v47  ;;  %1164 = vmatprep.subr.bf16.mxu1 %v1163_v60  ;;  %v347_v47 = vld [vmem:[%s1832_s1 + $0x58] sm:$0xff]  ;;  %v396_v60 = vld [vmem:[%s1832_s1 + $0x1e0] sm:$0xff] }
  0x24   :  { %1030 = vmatmul.mubr.f32.vlgmr.msra.gmra.mrb[0].mxu0 %v45_v30  ;;  %1065 = vmatmul.mubr.f32.vlgmr.msra.gmra.mrb[0].mxu1 %v21_v29  ;;  %v375_v29 = vld [vmem:[%s1832_s1 + $0x138] sm:$0xff]  ;;  %v1147_v30 = vpack.c.bf16 %v361_v21, %v360_v20 }
  0x25   :  { %1134 = vmatpush3.bf16.msra.mxu0 %v1133_v51  ;;  %1166 = vmatpush3.bf16.msra.mxu1 %v1165_v61  ;;  %v365_v51 = vld [vmem:[%s1832_s1 + $0xe8] sm:$0xff]  ;;  %v383_v20 = vld [vmem:[%s1832_s1 + $0x178] sm:$0xff] }
  0x26   :  { %1136 = vmatprep.subr.bf16.mxu0 %v1135_v52  ;;  %1168 = vmatprep.subr.bf16.mxu1 %v1167_v5  ;;  %v1181_v52 = vpack.c.bf16 %v377_v45, %v376_v44  ;;  %v1155_v58 = vpack.c.bf16 %v365_v51, %v364_v50  ;;  %v397_v61 = vld [vmem:[%s1832_s1 + $0x1e8] sm:$0xff]  ;;  %v351_v5 = vld [vmem:[%s1832_s1 + $0x78] sm:$0xff]  ;;  %v1193_v21 = vpack.c.bf16 %v383_v20, %v382_v19  ;;  %v402_v44 = vld [vmem:[%s1832_s1 + $0x210] sm:$0xff] }
  0x27   :  { %v1187_v2 = vpack.c.bf16 %v397_v61, %v396_v60  ;;  %v1161_v6 = vpack.c.bf16 %v351_v5, %v350_v4  ;;  %v403_v45 = vld [vmem:[%s1832_s1 + $0x218] sm:$0xff]  ;;  %v433_v50 = vld [vmem:[%s1832_s1 + $0x308] sm:$0xff]  ;;  %v450_v51 = vld [vmem:[%s1832_s1 + $0x390] sm:$0xff] }
  0x28   :  { %v422_v60 = vld [vmem:[%s1832_s1 + $0x2b0] sm:$0xff]  ;;  %v423_v61 = vld [vmem:[%s1832_s1 + $0x2b8] sm:$0xff]  ;;  %v408_v19 = vld [vmem:[%s1832_s1 + $0x240] sm:$0xff] }
  0x29   :  { %1138 = vmatpush3.bf16.msra.mxu0 %v1137_v59  ;;  %1170 = vmatpush3.bf16.msra.mxu1 %v1169_v9  ;;  %v349_v59 = vld [vmem:[%s1832_s1 + $0x68] sm:$0xff]  ;;  %v380_v9 = vld [vmem:[%s1832_s1 + $0x160] sm:$0xff]  ;;  %v1207_v4 = vpack.c.bf16 %v423_v61, %v422_v60  ;;  %v406_v5 = vld [vmem:[%s1832_s1 + $0x230] sm:$0xff] }
  0x2a   :  { %1140 = vmatprep.subr.bf16.mxu0 %v1139_v1  ;;  %1172 = vmatprep.subr.bf16.mxu1 %v1171_v18  ;;  %v1157_v1 = vpack.c.bf16 %v349_v59, %v348_v54  ;;  %v1189_v12 = vpack.c.bf16 %v381_v10, %v380_v9  ;;  %v1191_v18 = vpack.c.bf16 %v399_v17, %v398_v16  ;;  %v424_v10 = vld [vmem:[%s1832_s1 + $0x2c0] sm:$0xff]  ;;  %v454_v16 = vld [vmem:[%s1832_s1 + $0x3b0] sm:$0xff]  ;;  %v455_v17 = vld [vmem:[%s1832_s1 + $0x3b8] sm:$0xff] }
  0x2b   :  { %v1229_v59 = vpack.c.bf16 %v433_v50, %v432_v49  ;;  %v409_v20 = vld [vmem:[%s1832_s1 + $0x248] sm:$0xff]  ;;  %v459_v49 = vld [vmem:[%s1832_s1 + $0x3d8] sm:$0xff]  ;;  %v430_v50 = vld [vmem:[%s1832_s1 + $0x2f0] sm:$0xff] }
  0x2c   :  { %v414_v60 = vld [vmem:[%s1832_s1 + $0x270] sm:$0xff]  ;;  %v415_v61 = vld [vmem:[%s1832_s1 + $0x278] sm:$0xff] }
  0x2d   :  { %1142 = vmatpush3.bf16.msra.mxu0 %v1141_v11  ;;  %1174 = vmatpush3.bf16.msra.mxu1 %v1173_v23  ;;  %v1296_v23 = vmov 3  }
  0x2e   :  { %1144 = vmatprep.subr.bf16.mxu0 %v1143_v15  ;;  %1176 = vmatprep.subr.bf16.mxu1 %v1175_v27  ;;  %v1195_v15 = vpack.c.bf16 %v417_v14, %v416_v13  ;;  %v449_v27 = vld [vmem:[%s1832_s1 + $0x388] sm:$0xff]  ;;  %v436_v13 = vld [vmem:[%s1832_s1 + $0x320] sm:$0xff] }
  0x2f   :  { %v437_v14 = vld [vmem:[%s1832_s1 + $0x328] sm:$0xff] }
  0x31   :  { %1146 = vmatpush3.bf16.msra.mxu0 %v1145_v25 }
  0x32   :  { %1148 = vmatprep.subr.bf16.mxu0 %v1147_v30  ;;  %v1297_v30 = vmov 5  }
  0xf7   :  { %v1031_v32 = vpop.f32.mrb[0].mxu0  ;;  %v1066_v33 = vpop.f32.mrb[0].mxu1 }
  0xf8   :  { %v112_v34 = vpop.f32.mrb[1].mxu0  ;;  %v187_v35 = vpop.f32.mrb[1].mxu1  ;;  %vm197_vm1 = vcmp.gt.f32.partialorder %v1031_v32, 0.0 }
  0xf9   :  { %vm196_vm0 = vcmp.gt.f32.partialorder %v112_v34, 0.0  ;;  %v199_v38 = vsel %vm197_vm1, 1, %v1293_v36 }
  0xfa   :  { %v198_v37 = vsel %vm196_vm0, 1, %v1293_v36 }
  0xfb   :  { %201 = vperm.xlu0 %1273, %v198_v37   ;;  %v1177_v37 = vpack.c.bf16 %v375_v29, %v374_v28 }
  0xfd   :  { %1178 = vmatpush3.bf16.msra.mxu1 %v1177_v37 }
  0xff   :  { %204 = vperm.xlu0 %1273, %v199_v38   ;;  %v1149_v38 = vpack.c.bf16 %v345_v31, %v344_v26  ;;  %v448_v26 = vld [vmem:[%s1832_s1 + $0x380] sm:$0xff]  ;;  %v1298_v31 = vmov 4  }
 0x100   :  { %v1227_v29 = vpack.c.bf16 %v449_v27, %v448_v26  ;;  %v1213_v26 = vpack.c.bf16 %v409_v20, %v408_v19  ;;  %v410_v27 = vld [vmem:[%s1832_s1 + $0x250] sm:$0xff] }
 0x101   :  { %1150 = vmatpush3.bf16.msra.mxu0 %v1149_v38 }
 0x103   :  { %1275 = vset.pattern.permute.xlu0 %v1294_v42 }
 0x17a   :  { %v202_v39 = vpop.permute.xlu0 %201 }
 0x17b   :  { %vm206_vm2 = vcmp.eq.s32.totalorder %v202_v39, 1  ;;  %v346_v39 = vld [vmem:[%s1832_s1 + $0x50] sm:$0xff] }
 0x17c   :  { %v1391_v40 = vsel %vm206_vm2, %v112_v34, %v187_v35  ;;  %v362_v34 = vld [vmem:[%s1832_s1 + $0xd0] sm:$0xff]  ;;  %v363_v35 = vld [vmem:[%s1832_s1 + $0xd8] sm:$0xff]  ;;  %v1153_v53 = vpack.c.bf16 %v347_v47, %v346_v39  ;;  %v1301_v47 = vmov 1.0  }
 0x17d   :  { %212 = vperm.xlu1 %1274, %v1391_v40   ;;  %v1151_v46 = vpack.c.bf16 %v363_v35, %v362_v34  ;;  %v418_v34 = vld [vmem:[%s1832_s1 + $0x290] sm:$0xff]  ;;  %v419_v35 = vld [vmem:[%s1832_s1 + $0x298] sm:$0xff] }
 0x17e   :  { %v205_v41 = vpop.permute.xlu0 %204 }
 0x17f   :  { %vm207_vm3 = vcmp.eq.s32.totalorder %v205_v41, 1  ;;  %1152 = vmatprep.subr.bf16.mxu0 %v1151_v46  ;;  %v420_v46 = vld [vmem:[%s1832_s1 + $0x2a0] sm:$0xff] }
 0x180   :  { %v1395_v43 = vsel %vm207_vm3, %v1031_v32, %v1066_v33  ;;  %v392_v32 = vld [vmem:[%s1832_s1 + $0x1c0] sm:$0xff]  ;;  %v393_v33 = vld [vmem:[%s1832_s1 + $0x1c8] sm:$0xff]  ;;  %1154 = vmatpush3.bf16.msra.mxu0 %v1153_v53  ;;  %v1201_v53 = vpack.c.bf16 %v403_v45, %v402_v44  ;;  %v1203_v56 = vpack.c.bf16 %v421_v48, %v420_v46  ;;  %v458_v48 = vld [vmem:[%s1832_s1 + $0x3d0] sm:$0xff] }
 0x181   :  { %217 = vperm.xlu1 %1274, %v1395_v43   ;;  %v1179_v41 = vpack.c.bf16 %v393_v33, %v392_v32  ;;  %1156 = vmatprep.subr.bf16.mxu0 %v1155_v58  ;;  %v1299_v32 = vmov 6   ;;  %v401_v33 = vld [vmem:[%s1832_s1 + $0x208] sm:$0xff] }
 0x182   :  { %v405_v58 = vld [vmem:[%s1832_s1 + $0x228] sm:$0xff] }
 0x183   :  { %1180 = vmatprep.subr.bf16.mxu1 %v1179_v41  ;;  %v1199_v41 = vpack.c.bf16 %v419_v35, %v418_v34  ;;  %v441_v44 = vld [vmem:[%s1832_s1 + $0x348] sm:$0xff] }
 0x184   :  { %1182 = vmatpush3.bf16.msra.mxu1 %v1181_v52  ;;  %1158 = vmatpush3.bf16.msra.mxu0 %v1157_v1  ;;  %v451_v52 = vld [vmem:[%s1832_s1 + $0x398] sm:$0xff]  ;;  %v1205_v1 = vpack.c.bf16 %v405_v58, %v404_v57  ;;  %v413_v46 = vld [vmem:[%s1832_s1 + $0x268] sm:$0xff] }
 0x185   :  { %1276 = vset.pattern.permute.xlu1 %v1293_v36  ;;  %1184 = vmatprep.subr.bf16.mxu1 %v1183_v55  ;;  %v1231_v62 = vpack.c.bf16 %v451_v52, %v450_v51  ;;  %v431_v51 = vld [vmem:[%s1832_s1 + $0x2f8] sm:$0xff] }
 0x186   :  { %1160 = vmatprep.subr.bf16.mxu0 %v1159_v3  ;;  %v453_v3 = vld [vmem:[%s1832_s1 + $0x3a8] sm:$0xff] }
 0x188   :  { %1186 = vmatpush3.bf16.msra.mxu1 %v1185_v0  ;;  %1162 = vmatpush3.bf16.msra.mxu0 %v1161_v6  ;;  %v435_v0 = vld [vmem:[%s1832_s1 + $0x318] sm:$0xff] }
 0x189   :  { %1188 = vmatprep.subr.bf16.mxu1 %v1187_v2  ;;  %1196 = vmatprep.subr.bf16.mxu0 %v1195_v15  ;;  %v452_v2 = vld [vmem:[%s1832_s1 + $0x3a0] sm:$0xff]  ;;  %v407_v6 = vld [vmem:[%s1832_s1 + $0x238] sm:$0xff]  ;;  %v1233_v9 = vpack.c.bf16 %v435_v0, %v434_v63  ;;  %v461_v63 = vld [vmem:[%s1832_s1 + $0x3e8] sm:$0xff] }
 0x18a   :  { %v1209_v15 = vpack.c.bf16 %v407_v6, %v406_v5  ;;  %v462_v5 = vld [vmem:[%s1832_s1 + $0x3f0] sm:$0xff]  ;;  %v463_v6 = vld [vmem:[%s1832_s1 + $0x3f8] sm:$0xff] }
 0x18c   :  { %1190 = vmatpush3.bf16.msra.mxu1 %v1189_v12  ;;  %v1235_v12 = vpack.c.bf16 %v453_v3, %v452_v2  ;;  %v444_v2 = vld [vmem:[%s1832_s1 + $0x360] sm:$0xff]  ;;  %v445_v3 = vld [vmem:[%s1832_s1 + $0x368] sm:$0xff] }
 0x18d   :  { %1192 = vmatprep.subr.bf16.mxu1 %v1191_v18 }
 0x190   :  { %1194 = vmatpush3.bf16.msra.mxu1 %v1193_v21  ;;  %v1237_v21 = vpack.c.bf16 %v437_v14, %v436_v13 }
 0x191   :  { %1228 = vmatprep.subr.bf16.mxu1 %v1227_v29  ;;  %v439_v29 = vld [vmem:[%s1832_s1 + $0x338] sm:$0xff] }
 0x1fc   :  { %v213_v8 = vpop.permute.xlu1 %212 }
 0x1fd   :  { %v220_v11 = vmul.f32 %v213_v8, %v26_v7 }
 0x1ff   :  { %239 = vperm.xlu0 %1275, %v220_v11   ;;  %224 = vperm.xlu1 %1276, %v220_v11  }
 0x200   :  { %v218_v25 = vpop.permute.xlu1 %217 }
 0x201   :  { %v221_v28 = vmul.f32 %v218_v25, %v27_v24  ;;  %v1239_v25 = vpack.c.bf16 %v455_v17, %v454_v16 }
 0x203   :  { %1278 = vset.pattern.permute.xlu0 %v1295_v22  ;;  %1277 = vset.pattern.permute.xlu1 %v1296_v23 }
 0x204   :  { %253 = vperm.xlu0 %1278, %v220_v11   ;;  %267 = vperm.xlu1 %1277, %v220_v11  }
 0x208   :  { %1281 = vset.pattern.permute.xlu0 %v1296_v23  ;;  %1279 = vset.pattern.permute.xlu1 %v1294_v42  ;;  %v1300_v42 = vmov 7   ;;  %v427_v23 = vld [vmem:[%s1832_s1 + $0x2d8] sm:$0xff] }
 0x209   :  { %271 = vperm.xlu0 %1281, %v221_v28   ;;  %243 = vperm.xlu1 %1279, %v221_v28  }
 0x20d   :  { %1283 = vset.pattern.permute.xlu0 %v1297_v30  ;;  %1280 = vset.pattern.permute.xlu1 %v1293_v36  ;;  %v400_v36 = vld [vmem:[%s1832_s1 + $0x200] sm:$0xff] }
 0x20e   :  { %299 = vperm.xlu0 %1283, %v221_v28   ;;  %229 = vperm.xlu1 %1280, %v221_v28   ;;  %v1197_v39 = vpack.c.bf16 %v401_v33, %v400_v36  ;;  %v428_v36 = vld [vmem:[%s1832_s1 + $0x2e0] sm:$0xff]  ;;  %v429_v33 = vld [vmem:[%s1832_s1 + $0x2e8] sm:$0xff] }
 0x20f   :  { %v1219_v45 = vpack.c.bf16 %v429_v33, %v428_v36 }
 0x212   :  { %1286 = vset.pattern.permute.xlu0 %v1298_v31  ;;  %1282 = vset.pattern.permute.xlu1 %v1295_v22  ;;  %v426_v22 = vld [vmem:[%s1832_s1 + $0x2d0] sm:$0xff] }
 0x213   :  { %281 = vperm.xlu0 %1286, %v220_v11   ;;  %257 = vperm.xlu1 %1282, %v221_v28  }
 0x217   :  { %1290 = vset.pattern.permute.xlu0 %v1299_v32  ;;  %1284 = vset.pattern.permute.xlu1 %v1298_v31  ;;  %v411_v31 = vld [vmem:[%s1832_s1 + $0x258] sm:$0xff] }
 0x218   :  { %313 = vperm.xlu0 %1290, %v221_v28   ;;  %285 = vperm.xlu1 %1284, %v221_v28  }
 0x21c   :  { %1285 = vset.pattern.permute.xlu1 %v1297_v30  ;;  %1291 = vset.pattern.permute.xlu0 %v1300_v42  ;;  %v1215_v30 = vpack.c.bf16 %v427_v23, %v426_v22 }
 0x21d   :  { %295 = vperm.xlu1 %1285, %v220_v11  }
 0x221   :  { %1287 = vset.pattern.permute.xlu1 %v1300_v42 }
 0x222   :  { %323 = vperm.xlu1 %1287, %v220_v11  }
 0x226   :  { %1288 = vset.pattern.permute.xlu1 %v1299_v32  ;;  %v456_v32 = vld [vmem:[%s1832_s1 + $0x3c0] sm:$0xff] }
 0x227   :  { %309 = vperm.xlu1 %1288, %v220_v11   ;;  %v425_v11 = vld [vmem:[%s1832_s1 + $0x2c8] sm:$0xff] }
 0x228   :  { %v1211_v18 = vpack.c.bf16 %v425_v11, %v424_v10  ;;  %v1255_v10 = vpack.c.bf16 %v463_v6, %v462_v5  ;;  %v446_v11 = vld [vmem:[%s1832_s1 + $0x370] sm:$0xff] }
 0x22b   :  { %1289 = vset.pattern.permute.xlu1 %v1300_v42  ;;  %v457_v42 = vld [vmem:[%s1832_s1 + $0x3c8] sm:$0xff] }
 0x22c   :  { %327 = vperm.xlu1 %1289, %v221_v28   ;;  %v438_v28 = vld [vmem:[%s1832_s1 + $0x330] sm:$0xff] }
 0x22d   :  { %v1241_v34 = vpack.c.bf16 %v439_v29, %v438_v28 }
 0x27e   :  { %v225_v37 = vpop.permute.xlu1 %224  ;;  %v240_v38 = vpop.permute.xlu0 %239 }
 0x27f   :  { %vm232_vm4 = vcmp.lt.f32.partialorder %v1391_v40, %v225_v37  ;;  %vm246_vm5 = vcmp.lt.f32.partialorder %v1391_v40, %v240_v38  ;;  %v1217_v37 = vpack.c.bf16 %v411_v31, %v410_v27  ;;  %v1243_v38 = vpack.c.bf16 %v457_v42, %v456_v32 }
 0x280   :  { %789 = vmatprep.mubr.msk.f32.mxu0 %vm246_vm5, %v1301_v47 }
 0x281   :  { %790 = vmatmul.mubr.msk.f32.vlgmr.msra.gmra.mrb[2].mxu0 %vm232_vm4, %v1301_v47  ;;  %vm766_vm4 = vcmask 64512  }
 0x282   :  { %1198 = vmatpush3.bf16.msra.mxu0 %v1197_v39  ;;  %v412_v39 = vld [vmem:[%s1832_s1 + $0x260] sm:$0xff] }
 0x283   :  { %v268_v54 = vpop.permute.xlu1 %267  ;;  %v254_v55 = vpop.permute.xlu0 %253  ;;  %1200 = vmatprep.subr.bf16.mxu0 %v1199_v41  ;;  %v440_v41 = vld [vmem:[%s1832_s1 + $0x340] sm:$0xff] }
 0x284   :  { %vm274_vm6 = vcmp.lt.f32.partialorder %v1391_v40, %v268_v54  ;;  %vm260_vm7 = vcmp.lt.f32.partialorder %v1391_v40, %v254_v55  ;;  %v1245_v52 = vpack.c.bf16 %v441_v44, %v440_v41  ;;  %v1247_v54 = vpack.c.bf16 %v459_v49, %v458_v48  ;;  %v442_v55 = vld [vmem:[%s1832_s1 + $0x350] sm:$0xff] }
 0x285   :  { %793 = vmatprep.mubr.msk.f32.mxu1 %vm274_vm6, %v1301_v47 }
 0x286   :  { %1202 = vmatpush3.bf16.msra.mxu0 %v1201_v53  ;;  %794 = vmatmul.mubr.msk.f32.vlgmr.msra.gmra.mrb[2].mxu1 %vm260_vm7, %v1301_v47  ;;  %v1221_v53 = vpack.c.bf16 %v413_v46, %v412_v39 }
 0x287   :  { %1204 = vmatprep.subr.bf16.mxu0 %v1203_v56  ;;  %1230 = vmatpush3.bf16.msra.mxu1 %v1229_v59  ;;  %v443_v56 = vld [vmem:[%s1832_s1 + $0x358] sm:$0xff]  ;;  %v1223_v59 = vpack.c.bf16 %v431_v51, %v430_v50 }
 0x288   :  { %v244_v7 = vpop.permute.xlu1 %243  ;;  %v272_v8 = vpop.permute.xlu0 %271  ;;  %1232 = vmatprep.subr.bf16.mxu1 %v1231_v62  ;;  %v460_v62 = vld [vmem:[%s1832_s1 + $0x3e0] sm:$0xff]  ;;  %v1249_v0 = vpack.c.bf16 %v443_v56, %v442_v55 }
 0x289   :  { %vm247_vm8 = vcmp.lt.f32.partialorder %v1395_v43, %v244_v7  ;;  %vm275_vm9 = vcmp.lt.f32.partialorder %v1395_v43, %v272_v8 }
 0x28a   :  { %1206 = vmatpush3.bf16.msra.mxu0 %v1205_v1  ;;  %791 = vmatprep.mubr.msk.f32.mxu0 %vm247_vm8, %v1301_v47  ;;  %v1225_v1 = vpack.c.bf16 %v415_v61, %v414_v60 }
 0x28b   :  { %795 = vmatprep.mubr.msk.f32.mxu1 %vm275_vm9, %v1301_v47  ;;  %1208 = vmatprep.subr.bf16.mxu0 %v1207_v4  ;;  %v1251_v4 = vpack.c.bf16 %v461_v63, %v460_v62 }
 0x28c   :  { %1234 = vmatpush3.bf16.msra.mxu1 %v1233_v9  ;;  %v1253_v9 = vpack.c.bf16 %v445_v3, %v444_v2 }
 0x28d   :  { %v230_v24 = vpop.permute.xlu1 %229  ;;  %1236 = vmatprep.subr.bf16.mxu1 %v1235_v12  ;;  %v300_v57 = vpop.permute.xlu0 %299  ;;  %v447_v12 = vld [vmem:[%s1832_s1 + $0x378] sm:$0xff] }
 0x28e   :  { %vm233_vm10 = vcmp.lt.f32.partialorder %v1395_v43, %v230_v24  ;;  %1210 = vmatpush3.bf16.msra.mxu0 %v1209_v15  ;;  %vm303_vm14 = vcmp.lt.f32.partialorder %v1395_v43, %v300_v57  ;;  %v1257_v14 = vpack.c.bf16 %v447_v12, %v446_v11 }
 0x28f   :  { %792 = vmatmul.mubr.msk.f32.gmra.mrb[4].mxu0 %vm233_vm10, %v1301_v47  ;;  %1212 = vmatprep.subr.bf16.mxu0 %v1211_v18 }
 0x290   :  { %1238 = vmatpush3.bf16.msra.mxu1 %v1237_v21 }
 0x291   :  { %1240 = vmatprep.subr.bf16.mxu1 %v1239_v25 }
 0x292   :  { %1214 = vmatpush3.bf16.msra.mxu0 %v1213_v26  ;;  %v258_v35 = vpop.permute.xlu1 %257  ;;  %v282_v8 = vpop.permute.xlu0 %281 }
 0x293   :  { %vm261_vm11 = vcmp.lt.f32.partialorder %v1395_v43, %v258_v35  ;;  %1216 = vmatprep.subr.bf16.mxu0 %v1215_v30  ;;  %vm288_vm13 = vcmp.lt.f32.partialorder %v1391_v40, %v282_v8 }
 0x294   :  { %796 = vmatmul.mubr.msk.f32.gmra.mrb[4].mxu1 %vm261_vm11, %v1301_v47 }
 0x295   :  { %1242 = vmatpush3.bf16.msra.mxu1 %v1241_v34 }
 0x296   :  { %1218 = vmatpush3.bf16.msra.mxu0 %v1217_v37  ;;  %1244 = vmatprep.subr.bf16.mxu1 %v1243_v38 }
 0x297   :  { %v286_v58 = vpop.permute.xlu1 %285  ;;  %1220 = vmatprep.subr.bf16.mxu0 %v1219_v45  ;;  %v314_v16 = vpop.permute.xlu0 %313 }
 0x298   :  { %vm289_vm0 = vcmp.lt.f32.partialorder %v1395_v43, %v286_v58  ;;  %vm317_vm3 = vcmp.lt.f32.partialorder %v1395_v43, %v314_v16 }
 0x299   :  { %1246 = vmatpush3.bf16.msra.mxu1 %v1245_v52 }
 0x29a   :  { %1222 = vmatpush3.bf16.msra.mxu0 %v1221_v53  ;;  %1248 = vmatprep.subr.bf16.mxu1 %v1247_v54 }
 0x29b   :  { %1224 = vmatprep.subr.bf16.mxu0 %v1223_v59 }
 0x29c   :  { %v296_v7 = vpop.permute.xlu1 %295 }
 0x29d   :  { %vm302_vm12 = vcmp.lt.f32.partialorder %v1391_v40, %v296_v7  ;;  %1250 = vmatpush3.bf16.msra.mxu1 %v1249_v0 }
 0x29e   :  { %1226 = vmatpush3.bf16.msra.mxu0 %v1225_v1  ;;  %797 = vmatprep.mubr.msk.f32.mxu0 %vm302_vm12, %v1301_v47 }
 0x29f   :  { %1252 = vmatprep.subr.bf16.mxu1 %v1251_v4 }
 0x2a1   :  { %798 = vmatmul.mubr.msk.f32.vlgmr.msra.gmra.mrb[6].mxu0 %vm288_vm13, %v1301_v47  ;;  %v324_v13 = vpop.permute.xlu1 %323  ;;  %1254 = vmatpush3.bf16.msra.mxu1 %v1253_v9 }
 0x2a2   :  { %vm330_vm15 = vcmp.lt.f32.partialorder %v1391_v40, %v324_v13  ;;  %799 = vmatprep.mubr.msk.f32.mxu0 %vm303_vm14, %v1301_v47  ;;  %1256 = vmatprep.subr.bf16.mxu1 %v1255_v10 }
 0x2a3   :  { %801 = vmatprep.mubr.msk.f32.mxu1 %vm330_vm15, %v1301_v47 }
 0x2a5   :  { %800 = vmatmul.mubr.msk.f32.gmra.mrb[8].mxu0 %vm289_vm0, %v1301_v47  ;;  %1258 = vmatpush3.bf16.msra.mxu1 %v1257_v14 }
 0x2a6   :  { %v310_v15 = vpop.permute.xlu1 %309 }
 0x2a7   :  { %vm316_vm1 = vcmp.lt.f32.partialorder %v1391_v40, %v310_v15 }
 0x2a8   :  { %802 = vmatmul.mubr.msk.f32.vlgmr.msra.gmra.mrb[6].mxu1 %vm316_vm1, %v1301_v47 }
 0x2ab   :  { %v328_v17 = vpop.permute.xlu1 %327 }
 0x2ac   :  { %vm331_vm2 = vcmp.lt.f32.partialorder %v1395_v43, %v328_v17 }
 0x2ad   :  { %803 = vmatprep.mubr.msk.f32.mxu1 %vm331_vm2, %v1301_v47 }
 0x2ae   :  { %804 = vmatmul.mubr.msk.f32.gmra.mrb[8].mxu1 %vm317_vm3, %v1301_v47 }
 0x354   :  { %v877_v18 = vpop.f32.mrb[2].mxu0 }
 0x355   :  { %v878_v19 = vpop.f32.mrb[3].mxu0 }
 0x356   :  { %v879_v20 = vadd.f32 %v878_v19, %v877_v18 }
 0x359   :  { %v915_v21 = vpop.f32.mrb[2].mxu1 }
 0x35a   :  { %v916_v22 = vpop.f32.mrb[3].mxu1 }
 0x35b   :  { %v917_v23 = vadd.f32 %v916_v22, %v915_v21 }
 0x35d   :  { %v606_v24 = vadd.f32 %v917_v23, %v879_v20 }
 0x362   :  { %v880_v40 = vpop.f32.mrb[4].mxu0 }
 0x363   :  { %v881_v25 = vpop.f32.mrb[5].mxu0 }
 0x364   :  { %v882_v26 = vadd.f32 %v881_v25, %v880_v40 }
 0x367   :  { %v918_v27 = vpop.f32.mrb[4].mxu1 }
 0x368   :  { %v919_v28 = vpop.f32.mrb[5].mxu1 }
 0x369   :  { %v920_v29 = vadd.f32 %v919_v28, %v918_v27 }
 0x36b   :  { %v611_v30 = vadd.f32 %v920_v29, %v882_v26 }
 0x374   :  { %v953_v31 = vpop.f32.mrb[6].mxu0 }
 0x375   :  { %v954_v43 = vpop.f32.mrb[7].mxu0 }
 0x376   :  { %v955_v32 = vadd.f32 %v954_v43, %v953_v31 }
 0x378   :  { %v681_v42 = vadd.f32 %v955_v32, %v606_v24  ;;  %v956_v36 = vpop.f32.mrb[8].mxu0 }
 0x379   :  { %v957_v47 = vpop.f32.mrb[9].mxu0 }
 0x37a   :  { %v958_v33 = vadd.f32 %v957_v47, %v956_v36 }
 0x37b   :  { %v991_v34 = vpop.f32.mrb[6].mxu1 }
 0x37c   :  { %v686_v35 = vadd.f32 %v958_v33, %v611_v30  ;;  %v992_v37 = vpop.f32.mrb[7].mxu1 }
 0x37d   :  { %v993_v38 = vadd.f32 %v992_v37, %v991_v34 }
 0x37f   :  { %v756_v39 = vadd.f32 %v993_v38, %v681_v42 }
 0x381   :  { %v1259_v41 = vtrunc.f32 %v756_v39  ;;  %v994_v44 = vpop.f32.mrb[8].mxu1 }
 0x382   :  { %v995_v45 = vpop.f32.mrb[9].mxu1 }
 0x383   :  { %v1260_v46 = vcvt.f32.s32 %v1259_v41  ;;  %v996_v48 = vadd.f32 %v995_v45, %v994_v44 }
 0x385   :  { %767 = vst.msk [vmem:[%s1834_s5] sm:$0xff] %vm766_vm4, %v1260_v46  ;;  %v761_v49 = vadd.f32 %v996_v48, %v686_v35 }
 0x387   :  { %v1261_v50 = vtrunc.f32 %v761_v49 }
 0x389   :  { %v1262_v51 = vcvt.f32.s32 %v1261_v50 }
 0x38b   :  { %768 = vst.msk [vmem:[%s1834_s5 + $0x8] sm:$0xff] %vm766_vm4, %v1262_v51 }

</bundles_post_ra>
